<compile_context>
chip_gen: v5e
topology: v5e:2x2
jax: 0.10.0
libtpu: 0.0.40
codegen_flags: <defaults>
</compile_context>

<pallas_src>
import functools

import jax
import jax.numpy as jnp
from jax.experimental import pallas as pl
from jax.experimental.pallas import tpu as pltpu

EPS = 1e-5
LANE = 128
SUBLANE = 8


def _round_up(x, m):
    return (x + m - 1) // m * m


def _row_align(itemsize):
    # sublane holds 8 f32 rows; sub-32-bit dtypes pack 2/4 rows per sublane.
    return SUBLANE * max(1, 4 // max(int(itemsize), 1))


def _tpu_vmem_capacity():
    try:
        info = pltpu.get_tpu_info()
        cap = getattr(info, "vmem_capacity_bytes", None)
        if cap:
            return int(cap)
    except Exception:
        pass
    return 64 << 20  # conservative fallback (v7x per-TC VMEM)


def _vmem_limit_bytes(est_bytes, cap):
    # actual footprint + slack, never above ~3/4 of physical per-core VMEM.
    hi = int(0.75 * cap)
    return int(min(max(est_bytes + (2 << 20), 8 << 20), hi))


def _maybe_buffered_spec(block_shape, index_map, depth):
    """BlockSpec with deeper pipelining if this jax version supports it."""
    try:
        return pl.BlockSpec(block_shape, index_map, pipeline_mode=pl.Buffered(depth))
    except Exception:
        return pl.BlockSpec(block_shape, index_map)


# ---------------------------------------------------------------------------
# Shared in-kernel LayerNorm math (f32).  Padded feature lanes of x are zero;
# the (x - mean)^2 sum is corrected in closed form so statistics use the TRUE
# feature count (exact PyTorch LayerNorm semantics, no cancellation issue).
# ---------------------------------------------------------------------------
def _ln_normalize_f32(x_f32, inv_d, n_pad):
    s1 = jnp.sum(x_f32, axis=-1, keepdims=True)
    mean = s1 * inv_d
    d = x_f32 - mean                       # padded lanes become -mean
    s2 = jnp.sum(d * d, axis=-1, keepdims=True)
    if n_pad:
        s2 = s2 - n_pad * mean * mean      # remove padded-lane contribution
    var = s2 * inv_d
    rstd = jax.lax.rsqrt(var + EPS)
    return d * rstd                        # (x - mean) / sqrt(var + eps)


# ---------------------------------------------------------------------------
# Fused PreNorm + Linear, resident-weight path.
# Grid: (row tiles,).  Full (Dp, Dop) weight + bias stay in VMEM; LN runs once
# per row tile; padded W rows are zero so padded y lanes contribute nothing.
# ---------------------------------------------------------------------------
def _prenorm_linear_resident_kernel(x_ref, w_ref, b_ref, o_ref, *, inv_d, n_pad):
    x = x_ref[...].astype(jnp.float32)                        # (tm, Dp)
    y = _ln_normalize_f32(x, inv_d, n_pad)
    acc = jnp.dot(y.astype(w_ref.dtype), w_ref[...],
                  preferred_element_type=jnp.float32)          # MXU
    o_ref[...] = (acc + b_ref[...]).astype(o_ref.dtype)


# ---------------------------------------------------------------------------
# Fused PreNorm + Linear, j-tiled path (very large Dout).
# LN is computed once per row tile into VMEM scratch (at j == 0) and reused for
# every output-column tile; scratch holds y already cast to the MXU feed dtype.
# ---------------------------------------------------------------------------
def _prenorm_linear_tiled_kernel(x_ref, w_ref, b_ref, o_ref, y_scratch, *,
                                 inv_d, n_pad):
    @pl.when(pl.program_id(1) == 0)
    def _():
        x = x_ref[...].astype(jnp.float32)                    # (tm, Dp)
        y_scratch[...] = _ln_normalize_f32(x, inv_d, n_pad).astype(y_scratch.dtype)

    acc = jnp.dot(y_scratch[...], w_ref[...],
                  preferred_element_type=jnp.float32)          # MXU
    o_ref[...] = (acc + b_ref[...]).astype(o_ref.dtype)


def prenorm_linear_fused(x, gamma, beta, w, b, *, tm=512, tn=None,
                         force_tiled=False):
    """fn(LayerNorm(x)) with fn = Linear(D -> Dout), fused into one pallas_call.

    gamma/beta are folded into W/b on the host (algebraically exact), so the
    kernel only normalizes and matmuls.  Pass bf16 `w` to feed the MXU bf16.
    """
    B, N, D = x.shape
    Dout = w.shape[1]
    M = B * N

    xb = jnp.dtype(x.dtype).itemsize
    wdtype = w.dtype
    wb = jnp.dtype(wdtype).itemsize
    ob = xb

    row_align = _row_align(xb)
    Dp = _round_up(D, LANE)
    n_pad = Dp - D

    # ---- row tiling --------------------------------------------------------
    M_aligned = _round_up(M, row_align)
    tm = _round_up(min(tm, M_aligned), row_align)
    if M_aligned > row_align:
        # keep at least two row tiles so both v7x TensorCores get work
        tm = min(tm, _round_up(-(-M_aligned // 2), row_align))
    Mp = _round_up(M, tm)

    # ---- fold LayerNorm affine into the linear (exact) ---------------------
    w32 = w.astype(jnp.float32)
    w_f = gamma.astype(jnp.float32)[:, None] * w32             # W' = gamma * W
    b_f = beta.astype(jnp.float32) @ w32 + b.astype(jnp.float32)  # b' = beta@W + b

    cap = _tpu_vmem_capacity()
    budget = int(0.7 * cap)
    ln_tmp = 4 * tm * Dp * 4 + tm * Dp * wb    # f32 LN intermediates + y cast

    # ---- choose resident-W vs j-tiled path ---------------------------------
    Dop_res = _round_up(Dout, LANE)
    w_res_bytes = Dp * Dop_res * wb
    est_res = (2 * tm * Dp * xb + 2 * w_res_bytes + 2 * Dop_res * 4
               + 2 * tm * Dop_res * ob + ln_tmp)
    use_resident = ((not force_tiled)
                    and w_res_bytes <= (12 << 20)
                    and est_res <= budget)

    if use_resident:
        Dop = Dop_res
    else:
        if tn is None:
            tn = 512 if _round_up(Dout, 256) % 512 == 0 else 256
        tn = _round_up(min(tn, _round_up(Dout, 256)), 256)      # never < 256
        Dop = _round_up(Dout, tn)

    # ---- pad operands only when needed (no-pad fast path) ------------------
    x2 = x.reshape(M, D)
    if Mp != M or Dp != D:
        x2 = jnp.pad(x2, ((0, Mp - M), (0, Dp - D)))
    wp = w_f if (Dp == D and Dop == Dout) else jnp.pad(
        w_f, ((0, Dp - D), (0, Dop - Dout)))
    wp = wp.astype(wdtype)
    bp = (b_f if Dop == Dout else jnp.pad(b_f, (0, Dop - Dout))).reshape(1, Dop)

    if use_resident:
        out = pl.pallas_call(
            functools.partial(_prenorm_linear_resident_kernel,
                              inv_d=1.0 / D, n_pad=n_pad),
            out_shape=jax.ShapeDtypeStruct((Mp, Dop), x.dtype),
            grid=(Mp // tm,),
            in_specs=[
                pl.BlockSpec((tm, Dp), lambda i: (i, 0)),       # x row tile
                pl.BlockSpec((Dp, Dop), lambda i: (0, 0)),      # full W, resident
                pl.BlockSpec((1, Dop), lambda i: (0, 0)),       # bias, resident
            ],
            out_specs=pl.BlockSpec((tm, Dop), lambda i: (i, 0)),
            compiler_params=pltpu.CompilerParams(
                dimension_semantics=("parallel",),
                vmem_limit_bytes=_vmem_limit_bytes(est_res, cap)),
        )(x2, wp, bp)
    else:
        est = (2 * tm * Dp * xb + 3 * Dp * tn * wb + 2 * tn * 4
               + 2 * tm * tn * ob + tm * Dp * wb + ln_tmp)
        w_spec = _maybe_buffered_spec((Dp, tn), lambda i, j: (0, j), 3)
        out = pl.pallas_call(
            functools.partial(_prenorm_linear_tiled_kernel,
                              inv_d=1.0 / D, n_pad=n_pad),
            out_shape=jax.ShapeDtypeStruct((Mp, Dop), x.dtype),
            grid=(Mp // tm, Dop // tn),
            in_specs=[
                pl.BlockSpec((tm, Dp), lambda i, j: (i, 0)),    # x resident over j
                w_spec,                                          # W column tile
                pl.BlockSpec((1, tn), lambda i, j: (0, j)),      # bias tile
            ],
            out_specs=pl.BlockSpec((tm, tn), lambda i, j: (i, j)),
            scratch_shapes=[pltpu.VMEM((tm, Dp), wdtype)],       # normalized y
            compiler_params=pltpu.CompilerParams(
                dimension_semantics=("parallel", "arbitrary"),
                vmem_limit_bytes=_vmem_limit_bytes(est, cap)),
        )(x2, wp, bp)

    if Mp == M and Dop == Dout:
        return out.reshape(B, N, Dout)
    return out[:M, :Dout].reshape(B, N, Dout)


# ---------------------------------------------------------------------------
# Standalone LayerNorm kernel (general PreNorm path when `fn` is not a Linear).
# ---------------------------------------------------------------------------
def _layernorm_kernel(x_ref, gb_ref, o_ref, *, inv_d, n_pad):
    x = x_ref[...].astype(jnp.float32)                          # (tm, Dp)
    y = _ln_normalize_f32(x, inv_d, n_pad)
    gb = gb_ref[...]                                            # (2, Dp) f32
    o_ref[...] = (y * gb[0:1, :] + gb[1:2, :]).astype(o_ref.dtype)


def layernorm_pallas(x2d, gamma, beta, *, tm=512):
    M, D = x2d.shape
    xb = jnp.dtype(x2d.dtype).itemsize
    row_align = _row_align(xb)
    Dp = _round_up(D, LANE)
    n_pad = Dp - D

    M_aligned = _round_up(M, row_align)
    tm = _round_up(min(tm, M_aligned), row_align)
    if M_aligned > row_align:
        tm = min(tm, _round_up(-(-M_aligned // 2), row_align))
    Mp = _round_up(M, tm)

    xp = x2d if (Mp == M and Dp == D) else jnp.pad(
        x2d, ((0, Mp - M), (0, Dp - D)))
    gb = (jnp.zeros((2, Dp), jnp.float32)
          .at[0, :D].set(gamma.astype(jnp.float32))
          .at[1, :D].set(beta.astype(jnp.float32)))

    cap = _tpu_vmem_capacity()
    est = 2 * tm * Dp * xb * 2 + 4 * tm * Dp * 4 + 2 * 2 * Dp * 4

    out = pl.pallas_call(
        functools.partial(_layernorm_kernel, inv_d=1.0 / D, n_pad=n_pad),
        out_shape=jax.ShapeDtypeStruct((Mp, Dp), x2d.dtype),
        grid=(Mp // tm,),
        in_specs=[
            pl.BlockSpec((tm, Dp), lambda i: (i, 0)),
            pl.BlockSpec((2, Dp), lambda i: (0, 0)),            # gamma+beta resident
        ],
        out_specs=pl.BlockSpec((tm, Dp), lambda i: (i, 0)),
        compiler_params=pltpu.CompilerParams(
            dimension_semantics=("parallel",),
            vmem_limit_bytes=_vmem_limit_bytes(est, cap)),
    )(xp, gb)

    if Mp == M and Dp == D:
        return out
    return out[:M, :D]


def prenorm(x, gamma, beta, fn, **kwargs):
    """General PreNorm: Pallas LayerNorm, then arbitrary fn (run as plain JAX)."""
    B, N, D = x.shape
    normed = layernorm_pallas(x.reshape(B * N, D), gamma, beta).reshape(B, N, D)
    return fn(normed, **kwargs)


if __name__ == "__main__":
    key = jax.random.PRNGKey(0)
    ks = jax.random.split(key, 6)

    def ln_ref(x, gamma, beta):
        mean = jnp.mean(x, axis=-1, keepdims=True)
        var = jnp.mean((x - mean) ** 2, axis=-1, keepdims=True)
        return (x - mean) / jnp.sqrt(var + EPS) * gamma + beta

    # ---- Test 1: f32, resident-weight fused path (PreNorm + Linear) --------
    B, N, D, DOUT = 2, 8, 32, 32
    x = jax.random.normal(ks[0], (B, N, D), dtype=jnp.float32)
    gamma = 1.0 + 0.1 * jax.random.normal(ks[1], (D,), dtype=jnp.float32)
    beta = 0.05 * jax.random.normal(ks[2], (D,), dtype=jnp.float32)
    w = 0.02 * jax.random.normal(ks[3], (D, DOUT), dtype=jnp.float32)
    b = 0.02 * jax.random.normal(ks[4], (DOUT,), dtype=jnp.float32)

    out = jax.block_until_ready(prenorm_linear_fused(x, gamma, beta, w, b))
    ref = ln_ref(x, gamma, beta) @ w + b
    assert out.shape == (B, N, DOUT)
    assert jnp.allclose(out, ref, atol=1e-4, rtol=1e-4), \
        float(jnp.max(jnp.abs(out - ref)))

    # ---- Test 2: standalone Pallas LayerNorm + arbitrary fn (general path) -
    normed = jax.block_until_ready(
        layernorm_pallas(x.reshape(B * N, D), gamma, beta)).reshape(B, N, D)
    assert jnp.allclose(normed, ln_ref(x, gamma, beta), atol=1e-4, rtol=1e-4)

    out_g = jax.block_until_ready(prenorm(x, gamma, beta, jax.nn.gelu))
    assert jnp.allclose(out_g, jax.nn.gelu(ln_ref(x, gamma, beta)),
                        atol=1e-4, rtol=1e-4)

    # ---- Test 3: f32, forced j-tiled path (multi output-column steps) ------
    D2, DOUT2 = 64, 512
    x2 = jax.random.normal(ks[5], (B, N, D2), dtype=jnp.float32)
    g2 = 1.0 + 0.1 * jax.random.normal(ks[1], (D2,), dtype=jnp.float32)
    bt2 = 0.05 * jax.random.normal(ks[2], (D2,), dtype=jnp.float32)
    w2 = 0.02 * jax.random.normal(ks[3], (D2, DOUT2), dtype=jnp.float32)
    b2 = 0.02 * jax.random.normal(ks[4], (DOUT2,), dtype=jnp.float32)

    out2 = jax.block_until_ready(
        prenorm_linear_fused(x2, g2, bt2, w2, b2, tn=256, force_tiled=True))
    ref2 = ln_ref(x2, g2, bt2) @ w2 + b2
    assert out2.shape == (B, N, DOUT2)
    assert jnp.allclose(out2, ref2, atol=2e-4, rtol=2e-4), \
        float(jnp.max(jnp.abs(out2 - ref2)))

    # ---- Test 4: bf16 activations + bf16 weights (MXU-friendly operands) ---
    xb16 = x2.astype(jnp.bfloat16)
    out3 = jax.block_until_ready(
        prenorm_linear_fused(xb16, g2, bt2, w2.astype(jnp.bfloat16), b2,
                             tn=256, force_tiled=True))
    ref3 = ln_ref(xb16.astype(jnp.float32), g2, bt2) @ w2 + b2
    assert out3.dtype == jnp.bfloat16
    assert jnp.allclose(out3.astype(jnp.float32), ref3, atol=5e-2, rtol=5e-2), \
        float(jnp.max(jnp.abs(out3.astype(jnp.float32) - ref3)))

    # TODO(synk): for very large D (contraction axis exceeding a VMEM row tile)
    # add a K-tiled variant with a statistics pre-pass.
    print("KERNEL_OK")
</pallas_src>

<mosaic_0001>
module attributes {stable_mosaic.version = 11 : i64} {
  func.func @_prenorm_linear_resident_kernel(%arg0: i32, %arg1: memref<8x128xf32, #tpu.memory_space<vmem>>, %arg2: memref<128x128xf32, #tpu.memory_space<vmem>>, %arg3: memref<1x128xf32, #tpu.memory_space<vmem>>, %arg4: memref<8x128xf32, #tpu.memory_space<vmem>>) attributes {dimension_semantics = [#tpu.dimension_semantics<parallel>], iteration_bounds = array<i64: 2>, scalar_prefetch = 0 : i64, scratch_operands = 0 : i64, tpu.core_type = #tpu.core_type<tc>, window_params = [{transform_indices = @transform_0, window_bounds = array<i64: 8, 128>}, {pipeline_mode = #tpu.pipeline_mode<synchronous>, transform_indices = @transform_1, window_bounds = array<i64: 128, 128>}, {pipeline_mode = #tpu.pipeline_mode<synchronous>, transform_indices = @transform_2, window_bounds = array<i64: 1, 128>}, {transform_indices = @transform_3, window_bounds = array<i64: 8, 128>}]} {
    %c0 = arith.constant 0 : index
    %c0_0 = arith.constant 0 : index
    %0 = vector.load %arg1[%c0, %c0_0] : memref<8x128xf32, #tpu.memory_space<vmem>>, vector<8x128xf32>
    %cst = arith.constant dense<0.000000e+00> : vector<8xf32>
    %1 = vector.multi_reduction <add>, %0, %cst [1] : vector<8x128xf32> to vector<8xf32>
    %2 = vector.shape_cast %1 : vector<8xf32> to vector<8x1xf32>
    %cst_1 = arith.constant 3.125000e-02 : f32
    %3 = vector.broadcast %cst_1 : f32 to vector<8x1xf32>
    %4 = arith.mulf %2, %3 : vector<8x1xf32>
    %5 = vector.broadcast %4 : vector<8x1xf32> to vector<8x128xf32>
    %6 = arith.subf %0, %5 : vector<8x128xf32>
    %7 = arith.mulf %6, %6 : vector<8x128xf32>
    %cst_2 = arith.constant dense<0.000000e+00> : vector<8xf32>
    %8 = vector.multi_reduction <add>, %7, %cst_2 [1] : vector<8x128xf32> to vector<8xf32>
    %9 = vector.shape_cast %8 : vector<8xf32> to vector<8x1xf32>
    %cst_3 = arith.constant 9.600000e+01 : f32
    %10 = vector.broadcast %cst_3 : f32 to vector<8x1xf32>
    %11 = arith.mulf %10, %4 : vector<8x1xf32>
    %12 = arith.mulf %11, %4 : vector<8x1xf32>
    %13 = arith.subf %9, %12 : vector<8x1xf32>
    %cst_4 = arith.constant 3.125000e-02 : f32
    %14 = vector.broadcast %cst_4 : f32 to vector<8x1xf32>
    %15 = arith.mulf %13, %14 : vector<8x1xf32>
    %cst_5 = arith.constant 9.99999974E-6 : f32
    %16 = vector.broadcast %cst_5 : f32 to vector<8x1xf32>
    %17 = arith.addf %15, %16 : vector<8x1xf32>
    %18 = math.rsqrt %17 : vector<8x1xf32>
    %19 = vector.broadcast %18 : vector<8x1xf32> to vector<8x128xf32>
    %20 = arith.mulf %6, %19 : vector<8x128xf32>
    %c0_6 = arith.constant 0 : index
    %c0_7 = arith.constant 0 : index
    %21 = vector.load %arg2[%c0_6, %c0_7] : memref<128x128xf32, #tpu.memory_space<vmem>>, vector<128x128xf32>
    %cst_8 = arith.constant dense<0.000000e+00> : vector<8x128xf32>
    %22 = tpu.matmul %20, %21, %cst_8 {dimension_numbers = #tpu.dot_dimension_numbers<[1], [0], [0], [1], [0, 0, 1, 1], [], []>} : vector<8x128xf32>, vector<128x128xf32>, vector<8x128xf32> -> vector<8x128xf32>
    %c0_9 = arith.constant 0 : index
    %c0_10 = arith.constant 0 : index
    %23 = vector.load %arg3[%c0_9, %c0_10] : memref<1x128xf32, #tpu.memory_space<vmem>>, vector<1x128xf32>
    %24 = vector.broadcast %23 : vector<1x128xf32> to vector<8x128xf32>
    %25 = arith.addf %22, %24 : vector<8x128xf32>
    %c0_11 = arith.constant 0 : index
    %c0_12 = arith.constant 0 : index
    %26 = vector.load %arg4[%c0_11, %c0_12] : memref<8x128xf32, #tpu.memory_space<vmem>>, vector<8x128xf32>
    tpu.vector_store %arg4[%c0_11, %c0_12], %25 {strides = array<i32>} : memref<8x128xf32, #tpu.memory_space<vmem>>, vector<8x128xf32>,
    return
  }
  func.func @transform_0(%arg0: i32) -> (i32, i32) {
    %c0_i32 = arith.constant 0 : i32
    %c0_i32_0 = arith.constant 0 : i32
    return %arg0, %c0_i32 : i32, i32
  }
  func.func @transform_1(%arg0: i32) -> (i32, i32) {
    %c0_i32 = arith.constant 0 : i32
    %c0_i32_0 = arith.constant 0 : i32
    %c0_i32_1 = arith.constant 0 : i32
    return %c0_i32, %c0_i32_0 : i32, i32
  }
  func.func @transform_2(%arg0: i32) -> (i32, i32) {
    %c0_i32 = arith.constant 0 : i32
    %c0_i32_0 = arith.constant 0 : i32
    %c0_i32_1 = arith.constant 0 : i32
    return %c0_i32, %c0_i32_0 : i32, i32
  }
  func.func @transform_3(%arg0: i32) -> (i32, i32) {
    %c0_i32 = arith.constant 0 : i32
    %c0_i32_0 = arith.constant 0 : i32
    return %arg0, %c0_i32 : i32, i32
  }
}

</mosaic_0001>

<bundles_post_ra>
// kernel: tpu_custom_call.1
= control target key start
LH: loop header
LB: loop body
LE: loop exit
PB: predicated region body
PF: predicated region fallthrough
CT: control target
= control target key end

     0   :  { %8 = vsyncpa [#allocation3], 0  ;;  %s740_s0 = inlined_call_operand.hbm [shape: f32[16,128], index: 0, kind: input, shape index: {}]   ;;  %s741_s1 = inlined_call_operand.hbm [shape: f32[128,128], index: 1, kind: input, shape index: {}]   ;;  %s742_s2 = inlined_call_operand.vmem [shape: f32[1,128], index: 2, kind: input, shape index: {}]   ;;  %s743_s3 = inlined_call_operand.hbm [shape: f32[16,128], index: 3, kind: output, shape index: {}]  }
   0x1   :  { %10 = vsyncpa [#allocation3 + $0x1], 0 }
   0x2   :  { %11 = vsyncpa [#allocation6], 0 }
   0x3   :  { %12 = vsyncpa [#allocation4], 0 }
   0x4   :  { %14 = vsyncpa [#allocation4 + $0x1], 0  ;;  %s597_s12 = smov 0   ;;  %s599_s13 = smov 0  }
   0x5   :  { %s601_s14 = smov 0   ;;  %s603_s15 = smov 0  }
   0x6 LB: > { %s130_s18 = sshll.u32 %s741_s1, 4  ;;  %s621_s19 = sadd.s32 4294967295, %s572_s15   ;;  %s572_s15 = sphi %s603_s15, %s753_s15   ;;  %s568_s14 = sphi %s601_s14, %s752_s14   ;;  %s564_s13 = sphi %s599_s13, %s751_s13   ;;  %s560_s12 = sphi %s597_s12, %s750_s12   ;;  %s131_s18 = int_to_ptr.hbm [resolvable:$true] %s130_s18 }
   0x7   : > { %p367_p0 = scmp.ge.s32.totalorder %s572_s15, 1  ;;  %p41_p1 = scmp.eq.s32.totalorder %s621_s19, 0 }
   0x8   : > { %p119_p2 = scmp.lt.s32.totalorder %s572_s15, 3  ;;  %s574_s21 = smov [#allocation5]  }
   0x9   : > { %s132_s22 = sshll.u32 %s574_s21, 4  ;;  %s575_s23 = smov 128   ;;  %s133_s22 = int_to_ptr.vmem [resolvable:$true] %s132_s22 }
   0xa   : > { %p626_p3 = pnand %p367_p0, %p119_p2  ;;  %s576_s24 = smov 8  }
   0xb   : > { %s366_s25 = sadd.s32 4294967294, %s572_s15   ;;  %s637_s26 = sadd.s32 1, %s572_s15  }
   0xc   : > { %p388_p4 = pneg %p626_p3  ;;  %s27_s27 = sadd.s32 1, %s568_s14 }
   0xd   : > { %s24_s28 = ssub.s32 %s572_s15, %s637_s26  ;;  %p34_p7 = scmp.ne.s32.totalorder %s568_s14, %s564_s13 }
   0xe   : > { %p389_p6 = pnand %p388_p4, %p41_p1  ;;  %p25_p8 = scmp.eq.s32.totalorder %s24_s28, 0 }
   0xf   : > { %p35_p9 = scmp.eq.s32.totalorder %s572_s15, 0  ;;  %p40_p10 = scmp.ne.s32.totalorder %s564_s13, %s560_s12 }
  0x10   : > { %391 = dma.hbm_to_vmem [thread:$0]  (!%p389_p6), %s131_s18, 2048, %s133_s22, [#allocation6], %s575_s23, %s575_s23, %s576_s24  }
  0x11   : > { %p106_p11 = scmp.eq.s32.totalorder %s621_s19, 1  ;;  %p653_p12 = por %p41_p1, %p40_p10 }
  0x12   : > { %s649_s29 = scalar_select %p25_p8, %s568_s14, %s27_s27  }
  0x13   : > { %p657_p13 = por %p106_p11, %p34_p7  ;;  %p112_p0 = scmp.eq.s32.totalorder %s366_s25, 1 }
  0x14   : > { %p36_p2 = por %p35_p9, %p34_p7  ;;  %s149_s5 = sand.u32 1, %s568_s14  }
  0x15   : > { %p662_p4 = por %p112_p0, %p40_p10  ;;  %p401_p6 = scmp.lt.s32.totalorder %s572_s15, 2 }
  0x16   : > { %s370_s7 = sshll.u32 %s149_s5, 3  ;;  %s371_s8 = sshll.u32 %s572_s15, 3 }
  0x17   : > { %s157_s11 = scalar_lea.hbm %s740_s0, %s371_s8  ;;  %s153_s17 = scalar_lea.vmem [#allocation2], %s370_s7 }
  0x18   : > { %s159_s16 = sshll.u32 %s157_s11, 4  ;;  %s161_s18 = sshll.u32 %s153_s17, 4  ;;  %s160_s16 = int_to_ptr.hbm [resolvable:$true] %s159_s16  ;;  %s162_s18 = int_to_ptr.vmem [resolvable:$true] %s161_s18 }
  0x19   : > { %p671_p8 = pnand %p401_p6, %p36_p2  ;;  %s150_s22 = scalar_lea.sflag [#allocation3], %s149_s5 }
  0x1a   : > { %s472_s23 = sshra.s32 %s160_s16, 4  ;;  %s479_s28 = scalar_lea.hbm %s740_s0, 16  ;;  %s473_s23 = int_to_ptr.hbm [resolvable:$true] %s472_s23 }
  0x1b   : > { %s474_s24 = scalar_lea.hbm %s473_s23, 8  ;;  %p476_p9 = pneg %p671_p8 }
  0x1c   : > { %p475_p7 = scmp.ne.s32.totalorder %s473_s23, %s474_s24  ;;  %p480_p0 = scmp.lt.s32.totalorder %s473_s23, %s740_s0 }
  0x1d   : > { %p481_p2 = scmp.lt.s32.totalorder %s479_s28, %s474_s24 }
  0x1e   : > { %p477_p10 = pnand %p476_p9, %p475_p7 }
  0x1f   : > { %p482_p6 = por %p481_p2, %p480_p0 }
  0x20   : > { %p478_p11 = pneg %p477_p10 }
  0x22   : > { %p483_p5 = pnand %p482_p6, %p478_p11 }
  0x24   : > { %486 = shalt.err (!%p483_p5)
}
  0x25   : > { %395 = dma.hbm_to_vmem [thread:$0]  (!%p671_p8), %s160_s16, 128, %s162_s18, %s150_s22  }
  0x26   : > { %170 = sbr.rel (%p626_p3) target bundleno = 442 (0x1ba), region = 32  ;;  %s688_s5 = sand.u32 (!%p626_p3), 1, %s564_s13  }
  0x27   : > { %s373_s9 = sshll.u32 (!%p626_p3), %s688_s5, 3  ;;  %s173_s10 = scalar_lea.sflag (!%p626_p3), [#allocation3], %s688_s5 }
  0x28   : > { %s176_s11 = scalar_lea.vmem (!%p626_p3), [#allocation2], %s373_s9 }
  0x2b   : > { %547 = dma.done.wait (%p653_p12), %s173_s10, 128  }
  0x2c   : > { %549 = vsyncadd (%p653_p12), %s173_s10, 4294967168 }
  0x2d   : > { %551 = dma.done.wait (%p41_p1), [#allocation6], 2048  }
  0x2e   : > { %553 = vsyncadd (%p41_p1), [#allocation6], 4294965248  ;;  %v205_v0 = vld [vmem:[%s176_s11] sm:$0xff]  ;;  %v242_v3 = vld [vmem:[#allocation5 + $0x68] sm:$0xff]  ;;  %s377_s20 = sshll.u32 %s621_s19, 3  ;;  %s204_s22 = scalar_lea.vmem [#allocation7], %s373_s9 }
  0x2f   : > { %206 = vadd.xlane.f32.xlu0 %v205_v0  ;;  %v244_v1 = vld [vmem:[#allocation5 + $0x78] sm:$0xff]  ;;  %v243_v2 = vld [vmem:[#allocation5 + $0x70] sm:$0xff]  ;;  %v241_v8 = vld [vmem:[#allocation5 + $0x60] sm:$0xff]  ;;  %s281_s17 = scalar_lea.hbm %s743_s3, %s377_s20  ;;  %s283_s23 = sshll.u32 %s204_s22, 4  ;;  %s284_s23 = int_to_ptr.vmem [resolvable:$true] %s283_s23 }
  0x30   : > { %249 = vmatpush.msra.mxu0 %v244_v1  ;;  %v240_v9 = vld [vmem:[#allocation5 + $0x58] sm:$0xff]  ;;  %v239_v10 = vld [vmem:[#allocation5 + $0x50] sm:$0xff]  ;;  %v238_v11 = vld [vmem:[#allocation5 + $0x48] sm:$0xff]  ;;  %s285_s24 = sshll.u32 %s281_s17, 4  ;;  %s271_s25 = scalar_lea.sflag [#allocation4], %s688_s5  ;;  %s286_s24 = int_to_ptr.hbm [resolvable:$true] %s285_s24 }
  0x31   : > { %v237_v12 = vld [vmem:[#allocation5 + $0x40] sm:$0xff]  ;;  %v236_v13 = vld [vmem:[#allocation5 + $0x38] sm:$0xff]  ;;  %v235_v14 = vld [vmem:[#allocation5 + $0x30] sm:$0xff]  ;;  %s516_s19 = sshra.s32 %s286_s24, 4  ;;  %s522_s8 = scalar_lea.hbm %s743_s3, 16  ;;  %s517_s19 = int_to_ptr.hbm [resolvable:$true] %s516_s19 }
  0x32   : > { %250 = vmatpush.msra.mxu0 %v243_v2  ;;  %v234_v15 = vld [vmem:[#allocation5 + $0x28] sm:$0xff]  ;;  %v233_v16 = vld [vmem:[#allocation5 + $0x20] sm:$0xff]  ;;  %v232_v17 = vld [vmem:[#allocation5 + $0x18] sm:$0xff]  ;;  %s518_s27 = scalar_lea.hbm %s517_s19, 8  ;;  %p523_p12 = scmp.lt.s32.totalorder %s517_s19, %s743_s3 }
  0x33   : > { %v231_v18 = vld [vmem:[#allocation5 + $0x10] sm:$0xff]  ;;  %v230_v19 = vld [vmem:[#allocation5 + $0x8] sm:$0xff]  ;;  %v229_v20 = vld [vmem:[#allocation5] sm:$0xff]  ;;  %p519_p1 = scmp.ne.s32.totalorder %s517_s19, %s518_s27  ;;  %p524_p8 = scmp.lt.s32.totalorder %s522_s8, %s518_s27 }
  0x34   : > { %251 = vmatpush.msra.mxu0 %v242_v3  ;;  %v439_v35 = vld [vmem:[%s742_s2] ss:$0 sm:$0xff] }
  0x35   : > { %p520_p3 = pnand %p519_p1, %p657_p13  ;;  %p525_p7 = por %p524_p8, %p523_p12 }
  0x36   : > { %252 = vmatpush.msra.mxu0 %v241_v8 }
  0x37   : > { %p521_p5 = pneg %p520_p3 }
  0x38   : > { %253 = vmatpush.msra.mxu0 %v240_v9 }
  0x39   : > { %p526_p9 = pnand %p525_p7, %p521_p5 }
  0x3a   : > { %254 = vmatpush.msra.mxu0 %v239_v10 }
  0x3c   : > { %255 = vmatpush.msra.mxu0 %v238_v11 }
  0x3e   : > { %256 = vmatpush.msra.mxu0 %v237_v12 }
  0x40   : > { %257 = vmatpush.msra.mxu0 %v236_v13 }
  0x42   : > { %258 = vmatpush.msra.mxu0 %v235_v14 }
  0x44   : > { %259 = vmatpush.msra.mxu0 %v234_v15 }
  0x46   : > { %260 = vmatpush.msra.mxu0 %v233_v16 }
  0x48   : > { %261 = vmatpush.msra.mxu0 %v232_v17 }
  0x4a   : > { %262 = vmatpush.msra.mxu0 %v231_v18 }
  0x4c   : > { %263 = vmatpush.msra.mxu0 %v230_v19 }
  0x4e   : > { %264 = vmatpush.msra.mxu0 %v229_v20 }
  0xa2   : > { %v207_v4 = vpop.xlane.xlu0 %206 }
  0xa3   : > { %v208_v5 = vmul.f32 0.03125, %v207_v4 }
  0xa5   : > { %v209_v6 = vsub.f32 %v205_v0, %v208_v5  ;;  %v213_v21 = vmul.f32 96.0, %v208_v5 }
  0xa7   : > { %v210_v7 = vmul.f32 %v209_v6, %v209_v6  ;;  %v214_v22 = vmul.f32 %v213_v21, %v208_v5 }
  0xa9   : > { %211 = vadd.xlane.f32.xlu0 %v210_v7 }
 0x11c   : > { %v212_v23 = vpop.xlane.xlu0 %211 }
 0x11d   : > { %v215_v24 = vsub.f32 %v212_v23, %v214_v22 }
 0x11f   : > { %v216_v25 = vmul.f32 0.03125, %v215_v24 }
 0x121   : > { %v217_v26 = vadd.f32 1e-05, %v216_v25 }
 0x123   : > { %440 = vrsqrt.f32 %v217_v26  ;;  %vm224_vm1 = vweird.f32 %v217_v26 }
 0x129   : > { %v441_v27 = vpop.eup %440 }
 0x12a   : > { %v219_v28 = vmul.f32 %v441_v27, %v217_v26  ;;  %vm225_vm0 = vweird.f32 %v441_v27 }
 0x12b   : > { %vm226_vm2 = vmor %vm224_vm1, %vm225_vm0 }
 0x12c   : > { %v220_v29 = vmul.f32 %v441_v27, %v219_v28 }
 0x12e   : > { %v221_v30 = vmul.f32 0.5, %v220_v29 }
 0x130   : > { %v222_v31 = vsub.f32 1.5, %v221_v30 }
 0x132   : > { %v223_v32 = vmul.f32 %v441_v27, %v222_v31 }
 0x134   : > { %v227_v33 = vsel %vm226_vm2, %v441_v27, %v223_v32 }
 0x135   : > { %v228_v34 = vmul.f32 %v227_v33, %v209_v6 }
 0x137   : > { %265 = vmatmul.f32.vlgmr.msra.gmra.mxu0 %v228_v34 }
 0x1b4   : > { %v266_v36 = vpop.f32.mrf.mxu0 }
 0x1b5   : > { %v267_v37 = vadd.f32 %v439_v35, %v266_v36 }
 0x1b7   : > { %269 = vst [vmem:[%s204_s22] sm:$0xff] %v267_v37 }
 0x1b8   : > { %529 = shalt.err (!%p526_p9)
}
 0x1b9   : > { %386 = dma.vmem_to_hbm [thread:$0]  (%p657_p13), %s284_s23, 128, %s286_s24, %s271_s25  }
 0x1ba PF: > { %s297_s5 = sand.u32 1, %s560_s12   ;;  %p749_p10 = scmp.ge.s32.totalorder %s572_s15, 2 }
 0x1bb   : > { %s298_s11 = scalar_lea.sflag [#allocation4], %s297_s5 }
 0x1bc   : > { %p397_p11 = pnand %p749_p10, %p662_p4 }
 0x1be   : > { %p398_p0 = pneg %p397_p11 }
 0x1c0   : > { %555 = dma.done.wait (%p398_p0), %s298_s11, 128  }
 0x1c1   : > { %557 = vsyncadd (%p398_p0), %s298_s11, 4294967168  ;;  %p17_p2 = scmp.ge.s32.totalorder %s637_s26, 4   ;;  %s750_s12 = smov %s564_s13 }
 0x1c2   : > { %s751_s13 = smov %s568_s14  ;;  %s752_s14 = smov %s649_s29 }
 0x1c3   : > { %s753_s15 = smov %s637_s26  ;;  %19 = sbr.rel (!%p17_p2) target bundleno = 6 (0x6), region = 81 }
 0x1c8   :  { %304 = vsyncpa [#allocation3], 1 }
 0x1c9   :  { %306 = vsyncpa [#allocation3 + $0x1], 1 }
 0x1ca   :  { %307 = vsyncpa [#allocation6], 1 }
 0x1cb   :  { %308 = vsyncpa [#allocation4], 1 }
 0x1cc   :  { %310 = vsyncpa [#allocation4 + $0x1], 1 }

</bundles_post_ra>
